<compile_context>
chip_gen: v5e
topology: v5e:2x2
jax: 0.10.0
libtpu: 0.0.40
codegen_flags: <defaults>
</compile_context>

<pallas_src>
import jax
import jax.numpy as jnp
from jax.experimental import pallas as pl
from jax.experimental.pallas import tpu as pltpu

_IMG_ELEMS = 3 * 64 * 64      # 12288; multiple of 128 -> lane-dense last dim
_DEFAULT_BLOCK_ROWS = 256     # ~18 MiB (bf16 in + f32 out) per step
_VMEM_LIMIT_BYTES = 48 * 1024 * 1024  # fits br=256 double-buffered on v7x


def _cast_copy_kernel(x_ref, o_ref):
    # Element-wise cast to float32 (the ".float()" in the PyTorch module).
    # Purely HBM-bandwidth bound; the VPU cast hides under the DMA.
    o_ref[...] = x_ref[...].astype(jnp.float32)


def _pick_block_rows(n, block_rows):
    """Pick a row-block size.

    Constraints:
      * br must be a multiple of 8 (sublane tiling) OR equal to the full n.
      * Keep the grid at >= ~4 steps when n allows, so the "parallel" axis can
        be sharded across both TensorCores on v7x.
      * Never exceed `block_rows` (VMEM budget).
    """
    if n <= 8:
        return n                       # full-dim exception; single step
    target = -(-n // 4)                # cdiv(n, 4): aim for >= 4 grid steps
    target = ((target + 7) // 8) * 8   # round up to a multiple of 8
    return max(8, min(block_rows, target))


def animal_student_net_forward(x, *, block_rows=_DEFAULT_BLOCK_ROWS):
    """Equivalent of AnimalStudentNet.forward.

    Accepts any array whose total element count is a multiple of 3*64*64,
    reshapes to (-1, 3, 64, 64) and casts to float32 via a Pallas kernel.
    """
    # Glue: contiguous view -> lane-dense 2D slab (free, array is contiguous).
    x2 = jnp.reshape(x, (-1, _IMG_ELEMS))
    n = x2.shape[0]

    # Short-circuit: .float() on an already-float32 tensor is a no-op cast.
    # Avoid paying 8 B/elem of HBM traffic for a pure copy.
    if x2.dtype == jnp.float32:
        return jnp.reshape(x2, (n, 3, 64, 64))

    br = _pick_block_rows(n, block_rows)
    grid = (pl.cdiv(n, br),)

    out2 = pl.pallas_call(
        _cast_copy_kernel,
        out_shape=jax.ShapeDtypeStruct((n, _IMG_ELEMS), jnp.float32),
        grid_spec=pltpu.PrefetchScalarGridSpec(
            num_scalar_prefetch=0,
            grid=grid,
            in_specs=[
                pl.BlockSpec((br, _IMG_ELEMS), lambda i: (i, 0)),
            ],
            # TODO(synk): sweep pipeline_mode=pl.Buffered(3) on the output
            # spec if a profile shows exposed writeback DMA at this tile size.
            out_specs=pl.BlockSpec((br, _IMG_ELEMS), lambda i: (i, 0)),
        ),
        compiler_params=pltpu.CompilerParams(
            # "parallel" shards the grid across TCs on v7x; CORE_PARALLEL is a
            # sweep candidate but "parallel" is safe on 1-TC chips too.
            dimension_semantics=("parallel",),
            vmem_limit_bytes=_VMEM_LIMIT_BYTES,
        ),
    )(x2)

    # Glue: back to the NCHW view the PyTorch module returns.
    return jnp.reshape(out2, (n, 3, 64, 64))


if __name__ == "__main__":
    # AnimalStudentNet.__init__ defines no parameters, so there is nothing to
    # initialize beyond the input.
    key = jax.random.PRNGKey(0)
    # Small NCHW input consistent with the forward's view(-1, 3, 64, 64):
    # batch=2, channels=3, spatial=64x64. Use bfloat16 so the .float() cast
    # inside the kernel is non-trivial.
    x = jax.random.normal(key, (2, 3, 64, 64), dtype=jnp.bfloat16)

    y = animal_student_net_forward(x)
    y = jax.block_until_ready(y)

    # Sanity checks against the reference semantics.
    assert y.shape == (2, 3, 64, 64), y.shape
    assert y.dtype == jnp.float32, y.dtype
    ref = jnp.reshape(x, (-1, 3, 64, 64)).astype(jnp.float32)
    assert bool(jnp.array_equal(y, ref))

    # Ragged / multi-step grid path (n=130 -> br=40, 4 grid steps with a
    # partial tail block) to confirm partial-block handling and the larger
    # VMEM budget.
    key2 = jax.random.PRNGKey(0)
    x_big = jax.random.normal(key2, (130, 3, 64, 64), dtype=jnp.bfloat16)
    y_big = jax.block_until_ready(animal_student_net_forward(x_big))
    ref_big = jnp.reshape(x_big, (-1, 3, 64, 64)).astype(jnp.float32)
    assert y_big.shape == (130, 3, 64, 64) and y_big.dtype == jnp.float32
    assert bool(jnp.array_equal(y_big, ref_big))

    # float32 passthrough path (no kernel, pure reshape).
    x_f32 = jnp.reshape(ref, (-1,))
    y_f32 = jax.block_until_ready(animal_student_net_forward(x_f32))
    assert y_f32.shape == (2, 3, 64, 64) and y_f32.dtype == jnp.float32
    assert bool(jnp.array_equal(y_f32, ref))

    print("KERNEL_OK")
</pallas_src>

<mosaic_0001>
module attributes {stable_mosaic.version = 11 : i64} {
  func.func @_cast_copy_kernel(%arg0: i32, %arg1: memref<2x12288xbf16, #tpu.memory_space<vmem>>, %arg2: memref<2x12288xf32, #tpu.memory_space<vmem>>) attributes {dimension_semantics = [#tpu.dimension_semantics<parallel>], iteration_bounds = array<i64: 1>, scalar_prefetch = 0 : i64, scratch_operands = 0 : i64, tpu.core_type = #tpu.core_type<tc>, window_params = [{transform_indices = @transform_0, window_bounds = array<i64: 2, 12288>}, {transform_indices = @transform_1, window_bounds = array<i64: 2, 12288>}]} {
    %c0 = arith.constant 0 : index
    %c0_0 = arith.constant 0 : index
    %0 = vector.load %arg1[%c0, %c0_0] : memref<2x12288xbf16, #tpu.memory_space<vmem>>, vector<2x12288xbf16>
    %1 = arith.extf %0 : vector<2x12288xbf16> to vector<2x12288xf32>
    %c0_1 = arith.constant 0 : index
    %c0_2 = arith.constant 0 : index
    %2 = vector.load %arg2[%c0_1, %c0_2] : memref<2x12288xf32, #tpu.memory_space<vmem>>, vector<2x12288xf32>
    tpu.vector_store %arg2[%c0_1, %c0_2], %1 {strides = array<i32>} : memref<2x12288xf32, #tpu.memory_space<vmem>>, vector<2x12288xf32>,
    return
  }
  func.func @transform_0(%arg0: i32) -> (i32, i32) {
    %c0_i32 = arith.constant 0 : i32
    %c0_i32_0 = arith.constant 0 : i32
    return %arg0, %c0_i32 : i32, i32
  }
  func.func @transform_1(%arg0: i32) -> (i32, i32) {
    %c0_i32 = arith.constant 0 : i32
    %c0_i32_0 = arith.constant 0 : i32
    return %arg0, %c0_i32 : i32, i32
  }
}

</mosaic_0001>

<bundles_post_ra>
// kernel: tpu_custom_call.1
= control target key start
LH: loop header
LB: loop body
LE: loop exit
PB: predicated region body
PF: predicated region fallthrough
CT: control target
= control target key end

     0   :  { %6 = vsyncpa [#allocation3], 0  ;;  %s172_s0 = inlined_call_operand.hbm [shape: bf16[2,12288], index: 0, kind: input, shape index: {}]   ;;  %s173_s1 = inlined_call_operand.hbm [shape: f32[2,12288], index: 1, kind: output, shape index: {}]  }
   0x1   :  { %7 = vsyncpa [#allocation4], 0  ;;  %s13_s8 = sshll.u32 %s172_s0, 4  ;;  %s154_s9 = smov [#allocation2]   ;;  %s14_s8 = int_to_ptr.hbm [resolvable:$true] %s13_s8 }
   0x2   :  { %s15_s10 = sshll.u32 %s154_s9, 4  ;;  %s16_s10 = int_to_ptr.vmem [resolvable:$true] %s15_s10 }
   0x3   :  { %18 = dma.hbm_to_vmem [thread:$0]  %s14_s8, 1536, %s16_s10, [#allocation3]  }
   0x4   :  { %150 = dma.done.wait [#allocation3], 1536  }
   0x5   :  { %151 = vsyncadd [#allocation3], 4294965760  ;;  %v23_v0 = vld [vmem:[#allocation2] sm:$0xff]  ;;  %v24_v1 = vld [vmem:[#allocation2 + $0x8] sm:$0xff]  ;;  %s155_s0 = smov [#allocation5]   ;;  %s90_s14 = sshll.u32 %s173_s1, 4  ;;  %s91_s14 = int_to_ptr.hbm [resolvable:$true] %s90_s14 }
   0x6   :  { %v25_v2 = vld [vmem:[#allocation2 + $0x10] sm:$0xff]  ;;  %v35_v3 = vunpack.c.l.bf16 %v23_v0  ;;  %v36_v4 = vunpack.c.h.bf16 %v23_v0  ;;  %v37_v5 = vunpack.c.l.bf16 %v24_v1  ;;  %v38_v6 = vunpack.c.h.bf16 %v24_v1  ;;  %v26_v7 = vld [vmem:[#allocation2 + $0x18] sm:$0xff]  ;;  %v27_v10 = vld [vmem:[#allocation2 + $0x20] sm:$0xff]  ;;  %s88_s11 = sshll.u32 %s155_s0, 4  ;;  %s89_s11 = int_to_ptr.vmem [resolvable:$true] %s88_s11 }
   0x7   :  { %v39_v8 = vunpack.c.l.bf16 %v25_v2  ;;  %v40_v9 = vunpack.c.h.bf16 %v25_v2  ;;  %v41_v11 = vunpack.c.l.bf16 %v26_v7  ;;  %v42_v12 = vunpack.c.h.bf16 %v26_v7  ;;  %v28_v13 = vld [vmem:[#allocation2 + $0x28] sm:$0xff]  ;;  %v29_v16 = vld [vmem:[#allocation2 + $0x30] sm:$0xff]  ;;  %v30_v19 = vld [vmem:[#allocation2 + $0x38] sm:$0xff] }
   0x8   :  { %59 = vst [vmem:[#allocation5] sm:$0xff] %v35_v3  ;;  %v43_v14 = vunpack.c.l.bf16 %v27_v10  ;;  %v44_v15 = vunpack.c.h.bf16 %v27_v10  ;;  %v45_v17 = vunpack.c.l.bf16 %v28_v13  ;;  %v46_v18 = vunpack.c.h.bf16 %v28_v13  ;;  %v31_v22 = vld [vmem:[#allocation2 + $0x40] sm:$0xff]  ;;  %v32_v25 = vld [vmem:[#allocation2 + $0x48] sm:$0xff]  ;;  %v33_v28 = vld [vmem:[#allocation2 + $0x50] sm:$0xff] }
   0x9   :  { %60 = vst [vmem:[#allocation5 + $0x8] sm:$0xff] %v36_v4  ;;  %v47_v20 = vunpack.c.l.bf16 %v29_v16  ;;  %v48_v21 = vunpack.c.h.bf16 %v29_v16  ;;  %v49_v23 = vunpack.c.l.bf16 %v30_v19  ;;  %v50_v24 = vunpack.c.h.bf16 %v30_v19  ;;  %v34_v31 = vld [vmem:[#allocation2 + $0x58] sm:$0xff] }
   0xa   :  { %61 = vst [vmem:[#allocation5 + $0x10] sm:$0xff] %v37_v5  ;;  %v51_v26 = vunpack.c.l.bf16 %v31_v22  ;;  %v52_v27 = vunpack.c.h.bf16 %v31_v22  ;;  %v53_v29 = vunpack.c.l.bf16 %v32_v25  ;;  %v54_v30 = vunpack.c.h.bf16 %v32_v25 }
   0xb   :  { %62 = vst [vmem:[#allocation5 + $0x18] sm:$0xff] %v38_v6  ;;  %v55_v32 = vunpack.c.l.bf16 %v33_v28  ;;  %v56_v33 = vunpack.c.h.bf16 %v33_v28  ;;  %v57_v34 = vunpack.c.l.bf16 %v34_v31  ;;  %v58_v35 = vunpack.c.h.bf16 %v34_v31 }
   0xc   :  { %63 = vst [vmem:[#allocation5 + $0x20] sm:$0xff] %v39_v8 }
   0xd   :  { %64 = vst [vmem:[#allocation5 + $0x28] sm:$0xff] %v40_v9 }
   0xe   :  { %65 = vst [vmem:[#allocation5 + $0x30] sm:$0xff] %v41_v11 }
   0xf   :  { %66 = vst [vmem:[#allocation5 + $0x38] sm:$0xff] %v42_v12 }
  0x10   :  { %67 = vst [vmem:[#allocation5 + $0x40] sm:$0xff] %v43_v14 }
  0x11   :  { %68 = vst [vmem:[#allocation5 + $0x48] sm:$0xff] %v44_v15 }
  0x12   :  { %69 = vst [vmem:[#allocation5 + $0x50] sm:$0xff] %v45_v17 }
  0x13   :  { %70 = vst [vmem:[#allocation5 + $0x58] sm:$0xff] %v46_v18 }
  0x14   :  { %71 = vst [vmem:[#allocation5 + $0x60] sm:$0xff] %v47_v20 }
  0x15   :  { %72 = vst [vmem:[#allocation5 + $0x68] sm:$0xff] %v48_v21 }
  0x16   :  { %73 = vst [vmem:[#allocation5 + $0x70] sm:$0xff] %v49_v23 }
  0x17   :  { %74 = vst [vmem:[#allocation5 + $0x78] sm:$0xff] %v50_v24 }
  0x18   :  { %75 = vst [vmem:[#allocation5 + $0x80] sm:$0xff] %v51_v26 }
  0x19   :  { %76 = vst [vmem:[#allocation5 + $0x88] sm:$0xff] %v52_v27 }
  0x1a   :  { %77 = vst [vmem:[#allocation5 + $0x90] sm:$0xff] %v53_v29 }
  0x1b   :  { %78 = vst [vmem:[#allocation5 + $0x98] sm:$0xff] %v54_v30 }
  0x1c   :  { %79 = vst [vmem:[#allocation5 + $0xa0] sm:$0xff] %v55_v32 }
  0x1d   :  { %80 = vst [vmem:[#allocation5 + $0xa8] sm:$0xff] %v56_v33 }
  0x1e   :  { %81 = vst [vmem:[#allocation5 + $0xb0] sm:$0xff] %v57_v34 }
  0x1f   :  { %82 = vst [vmem:[#allocation5 + $0xb8] sm:$0xff] %v58_v35 }
  0x20   :  { %93 = dma.vmem_to_hbm [thread:$0]  %s89_s11, 3072, %s91_s14, [#allocation4]  }
  0x21   :  { %152 = dma.done.wait [#allocation4], 3072  }
  0x22   :  { %153 = vsyncadd [#allocation4], 4294964224 }
  0x23   :  { %98 = vsyncpa [#allocation3], 1 }
  0x24   :  { %99 = vsyncpa [#allocation4], 1 }

</bundles_post_ra>
